<compile_context>
chip_gen: v7x
topology: tpu7x:2x2x1
jax: 0.10.0
libtpu: 0.0.40
codegen_flags: <defaults>
</compile_context>

<pallas_src>
import functools

import jax
import jax.numpy as jnp
from jax.experimental import pallas as pl
from jax.experimental.pallas import tpu as pltpu


def _round_up(n, m):
    return ((n + m - 1) // m) * m


# --------------------------------------------------------------------------- kernel

def dueling_q_kernel(x_ref, w1_ref, b1_ref, wmid_ref, bmid_ref, wq_ref, bq_ref, q_ref):
    # feature = ReLU(x @ W1 + b1)                                   (TB, H)
    h = jnp.dot(x_ref[...], w1_ref[...], preferred_element_type=jnp.float32) + b1_ref[...]
    h = jnp.maximum(h, 0.0)
    # fused value/advantage hidden layer: ReLU(h @ [Wv1 | Wa1])     (TB, 2H)
    va = jnp.dot(h, wmid_ref[...], preferred_element_type=jnp.float32) + bmid_ref[...]
    va = jnp.maximum(va, 0.0)
    # fused output layer: value broadcast + mean-centred advantage already folded
    # into the weights -> q directly, lane-padded to 128            (TB, OUT_PAD)
    q_ref[...] = jnp.dot(va, wq_ref[...], preferred_element_type=jnp.float32) + bq_ref[...]


# -------------------------------------------------------------------- param prep (1x)

def prepare_params(params, action_size):
    """One-time host-side fusion of PyTorch-shaped weights (W: (out,in), b: (out,))."""
    f32 = lambda a: jnp.asarray(a, jnp.float32)

    w1 = f32(params["w1"]).T                        # (S, H)
    b1 = f32(params["b1"]).reshape(1, -1)           # (1, H)

    # fuse the two stream-1 layers into one 256-wide matmul
    w_mid = jnp.concatenate([f32(params["wv1"]).T, f32(params["wa1"]).T], axis=1)     # (H, 2H)
    b_mid = jnp.concatenate([f32(params["bv1"]), f32(params["ba1"])]).reshape(1, -1)  # (1, 2H)

    # fold the advantage-mean subtraction into the advantage output weights
    wa2_t = f32(params["wa2"]).T                    # (H, A)
    ba2 = f32(params["ba2"])                        # (A,)
    wa2_c = wa2_t - jnp.mean(wa2_t, axis=1, keepdims=True)
    ba2_c = ba2 - jnp.mean(ba2)

    wv2_t = f32(params["wv2"]).T                    # (H, 1)
    bv2 = f32(params["bv2"])                        # (1,)

    H = w1.shape[1]
    A = int(action_size)
    out_pad = _round_up(max(A, 1), 128)             # lane-dense output slab

    # block-structured output weight: value column broadcast across the action
    # columns, centred-advantage columns below it; q = [v | a] @ w_q + b_q.
    w_q = jnp.zeros((2 * H, out_pad), jnp.float32)
    w_q = w_q.at[:H, :A].set(jnp.broadcast_to(wv2_t, (H, A)))
    w_q = w_q.at[H:, :A].set(wa2_c)
    b_q = jnp.zeros((1, out_pad), jnp.float32)
    b_q = b_q.at[0, :A].set(bv2[0] + ba2_c)

    return dict(w1=w1, b1=b1, w_mid=w_mid, b_mid=b_mid, w_q=w_q, b_q=b_q)


# ------------------------------------------------------------------------- forward

@functools.partial(jax.jit, static_argnames=("action_size", "tb_max"))
def dueling_q_forward(x, fused, *, action_size, tb_max=512):
    x = jnp.asarray(x, jnp.float32)
    B, S = x.shape
    w1, b1 = fused["w1"], fused["b1"]
    w_mid, b_mid = fused["w_mid"], fused["b_mid"]
    w_q, b_q = fused["w_q"], fused["b_q"]
    H = w1.shape[1]
    H2 = w_mid.shape[1]
    OUT = w_q.shape[1]

    # Batch tile: multiple of 8 sublanes; TB<=512 keeps the per-step live VMEM
    # (x/q double buffers + (TB, 2H) intermediates + ~270 KB of resident weights)
    # in the low-MB range, comfortably under the v7x 64 MiB budget.
    b_pad = max(_round_up(B, 8), 8)
    if b_pad <= tb_max:
        tb = b_pad
    else:
        tb = tb_max
        b_pad = _round_up(B, tb)

    if b_pad != B:
        x = jnp.pad(x, ((0, b_pad - B), (0, 0)))

    grid = (b_pad // tb,)

    def resident(shape):
        return pl.BlockSpec(shape, lambda i: (0, 0))

    flops = 2 * b_pad * (S * H + H * H2 + H2 * OUT)
    bytes_accessed = 4 * (b_pad * S + b_pad * OUT + w1.size + b1.size
                          + w_mid.size + b_mid.size + w_q.size + b_q.size)

    q_pad = pl.pallas_call(
        dueling_q_kernel,
        out_shape=jax.ShapeDtypeStruct((b_pad, OUT), jnp.float32),
        grid=grid,
        in_specs=[
            pl.BlockSpec((tb, S), lambda i: (i, 0)),      # x: tiled over batch
            resident(w1.shape), resident(b1.shape),       # weights: VMEM-resident
            resident(w_mid.shape), resident(b_mid.shape),
            resident(w_q.shape), resident(b_q.shape),
        ],
        out_specs=pl.BlockSpec((tb, OUT), lambda i: (i, 0)),
        compiler_params=pltpu.CompilerParams(
            dimension_semantics=("parallel",)),
        cost_estimate=pl.CostEstimate(
            flops=flops, transcendentals=0, bytes_accessed=bytes_accessed),
    )(x, w1, b1, w_mid, b_mid, w_q, b_q)

    return q_pad[:B, :action_size]


# ----------------------------------------------------------------- init & reference

def init_params(key, state_size, action_size, hidden_size=128):
    """Deterministic synthetic init with PyTorch nn.Linear shapes: W (out,in), b (out,)."""
    ks = jax.random.split(key, 10)

    def lin(kw, kb, fan_in, fan_out):
        bound = 1.0 / jnp.sqrt(fan_in)
        w = jax.random.uniform(kw, (fan_out, fan_in), jnp.float32, -bound, bound)
        b = jax.random.uniform(kb, (fan_out,), jnp.float32, -bound, bound)
        return w, b

    w1, b1 = lin(ks[0], ks[1], state_size, hidden_size)
    wv1, bv1 = lin(ks[2], ks[3], hidden_size, hidden_size)
    wv2, bv2 = lin(ks[4], ks[5], hidden_size, 1)
    wa1, ba1 = lin(ks[6], ks[7], hidden_size, hidden_size)
    wa2, ba2 = lin(ks[8], ks[9], hidden_size, action_size)
    return dict(w1=w1, b1=b1, wv1=wv1, bv1=bv1, wv2=wv2, bv2=bv2,
                wa1=wa1, ba1=ba1, wa2=wa2, ba2=ba2)


def reference_forward(x, p):
    """Plain-JAX reference matching the PyTorch forward exactly."""
    h = jnp.maximum(x @ p["w1"].T + p["b1"], 0.0)
    v = jnp.maximum(h @ p["wv1"].T + p["bv1"], 0.0)
    value = v @ p["wv2"].T + p["bv2"]
    a = jnp.maximum(h @ p["wa1"].T + p["ba1"], 0.0)
    adv = a @ p["wa2"].T + p["ba2"]
    return value + (adv - adv.mean(axis=1, keepdims=True))


if __name__ == "__main__":
    batch = 8
    state_size = 16
    action_size = 4
    hidden_size = 128

    key = jax.random.PRNGKey(0)
    kx, kp = jax.random.split(key)
    x = jax.random.normal(kx, (batch, state_size), jnp.float32)
    params = init_params(kp, state_size, action_size, hidden_size)

    # One-time weight fusion/fold; reused across all forward calls.
    fused = prepare_params(params, action_size)

    q = dueling_q_forward(x, fused, action_size=action_size)
    q = jax.block_until_ready(q)

    q_ref = reference_forward(x, params)
    assert q.shape == (batch, action_size)
    assert jnp.allclose(q, q_ref, atol=1e-4, rtol=1e-4), "mismatch vs reference"

    print("KERNEL_OK")
</pallas_src>

<mosaic_0001>
module attributes {stable_mosaic.version = 11 : i64} {
  func.func @dueling_q_kernel(%arg0: i32, %arg1: memref<8x16xf32, #tpu.memory_space<vmem>>, %arg2: memref<16x128xf32, #tpu.memory_space<vmem>>, %arg3: memref<1x128xf32, #tpu.memory_space<vmem>>, %arg4: memref<128x256xf32, #tpu.memory_space<vmem>>, %arg5: memref<1x256xf32, #tpu.memory_space<vmem>>, %arg6: memref<256x128xf32, #tpu.memory_space<vmem>>, %arg7: memref<1x128xf32, #tpu.memory_space<vmem>>, %arg8: memref<8x128xf32, #tpu.memory_space<vmem>>) attributes {dimension_semantics = [#tpu.dimension_semantics<parallel>], iteration_bounds = array<i64: 1>, scalar_prefetch = 0 : i64, scratch_operands = 0 : i64, tpu.core_type = #tpu.core_type<tc>, window_params = [{transform_indices = @transform_0, window_bounds = array<i64: 8, 16>}, {pipeline_mode = #tpu.pipeline_mode<synchronous>, transform_indices = @transform_1, window_bounds = array<i64: 16, 128>}, {pipeline_mode = #tpu.pipeline_mode<synchronous>, transform_indices = @transform_2, window_bounds = array<i64: 1, 128>}, {pipeline_mode = #tpu.pipeline_mode<synchronous>, transform_indices = @transform_3, window_bounds = array<i64: 128, 256>}, {pipeline_mode = #tpu.pipeline_mode<synchronous>, transform_indices = @transform_4, window_bounds = array<i64: 1, 256>}, {pipeline_mode = #tpu.pipeline_mode<synchronous>, transform_indices = @transform_5, window_bounds = array<i64: 256, 128>}, {pipeline_mode = #tpu.pipeline_mode<synchronous>, transform_indices = @transform_6, window_bounds = array<i64: 1, 128>}, {transform_indices = @transform_7, window_bounds = array<i64: 8, 128>}]} {
    %c0 = arith.constant 0 : index
    %c0_0 = arith.constant 0 : index
    %0 = vector.load %arg1[%c0, %c0_0] : memref<8x16xf32, #tpu.memory_space<vmem>>, vector<8x16xf32>
    %c0_1 = arith.constant 0 : index
    %c0_2 = arith.constant 0 : index
    %1 = vector.load %arg2[%c0_1, %c0_2] : memref<16x128xf32, #tpu.memory_space<vmem>>, vector<16x128xf32>
    %cst = arith.constant dense<0.000000e+00> : vector<8x128xf32>
    %2 = tpu.matmul %0, %1, %cst {dimension_numbers = #tpu.dot_dimension_numbers<[1], [0], [0], [1], [0, 0, 1, 1], [], []>} : vector<8x16xf32>, vector<16x128xf32>, vector<8x128xf32> -> vector<8x128xf32>
    %c0_3 = arith.constant 0 : index
    %c0_4 = arith.constant 0 : index
    %3 = vector.load %arg3[%c0_3, %c0_4] : memref<1x128xf32, #tpu.memory_space<vmem>>, vector<1x128xf32>
    %4 = vector.broadcast %3 : vector<1x128xf32> to vector<8x128xf32>
    %5 = arith.addf %2, %4 : vector<8x128xf32>
    %cst_5 = arith.constant 0.000000e+00 : f32
    %6 = vector.broadcast %cst_5 : f32 to vector<8x128xf32>
    %7 = arith.maximumf %5, %6 : vector<8x128xf32>
    %c0_6 = arith.constant 0 : index
    %c0_7 = arith.constant 0 : index
    %8 = vector.load %arg4[%c0_6, %c0_7] : memref<128x256xf32, #tpu.memory_space<vmem>>, vector<128x256xf32>
    %cst_8 = arith.constant dense<0.000000e+00> : vector<8x256xf32>
    %9 = tpu.matmul %7, %8, %cst_8 {dimension_numbers = #tpu.dot_dimension_numbers<[1], [0], [0], [1], [0, 0, 1, 1], [], []>} : vector<8x128xf32>, vector<128x256xf32>, vector<8x256xf32> -> vector<8x256xf32>
    %c0_9 = arith.constant 0 : index
    %c0_10 = arith.constant 0 : index
    %10 = vector.load %arg5[%c0_9, %c0_10] : memref<1x256xf32, #tpu.memory_space<vmem>>, vector<1x256xf32>
    %11 = vector.broadcast %10 : vector<1x256xf32> to vector<8x256xf32>
    %12 = arith.addf %9, %11 : vector<8x256xf32>
    %cst_11 = arith.constant 0.000000e+00 : f32
    %13 = vector.broadcast %cst_11 : f32 to vector<8x256xf32>
    %14 = arith.maximumf %12, %13 : vector<8x256xf32>
    %c0_12 = arith.constant 0 : index
    %c0_13 = arith.constant 0 : index
    %15 = vector.load %arg6[%c0_12, %c0_13] : memref<256x128xf32, #tpu.memory_space<vmem>>, vector<256x128xf32>
    %cst_14 = arith.constant dense<0.000000e+00> : vector<8x128xf32>
    %16 = tpu.matmul %14, %15, %cst_14 {dimension_numbers = #tpu.dot_dimension_numbers<[1], [0], [0], [1], [0, 0, 1, 1], [], []>} : vector<8x256xf32>, vector<256x128xf32>, vector<8x128xf32> -> vector<8x128xf32>
    %c0_15 = arith.constant 0 : index
    %c0_16 = arith.constant 0 : index
    %17 = vector.load %arg7[%c0_15, %c0_16] : memref<1x128xf32, #tpu.memory_space<vmem>>, vector<1x128xf32>
    %18 = vector.broadcast %17 : vector<1x128xf32> to vector<8x128xf32>
    %19 = arith.addf %16, %18 : vector<8x128xf32>
    %c0_17 = arith.constant 0 : index
    %c0_18 = arith.constant 0 : index
    %20 = vector.load %arg8[%c0_17, %c0_18] : memref<8x128xf32, #tpu.memory_space<vmem>>, vector<8x128xf32>
    tpu.vector_store %arg8[%c0_17, %c0_18], %19 {strides = array<i32>} : memref<8x128xf32, #tpu.memory_space<vmem>>, vector<8x128xf32>,
    return
  }
  func.func @transform_0(%arg0: i32) -> (i32, i32) {
    %c0_i32 = arith.constant 0 : i32
    %c0_i32_0 = arith.constant 0 : i32
    return %arg0, %c0_i32 : i32, i32
  }
  func.func @transform_1(%arg0: i32) -> (i32, i32) {
    %c0_i32 = arith.constant 0 : i32
    %c0_i32_0 = arith.constant 0 : i32
    %c0_i32_1 = arith.constant 0 : i32
    return %c0_i32, %c0_i32_0 : i32, i32
  }
  func.func @transform_2(%arg0: i32) -> (i32, i32) {
    %c0_i32 = arith.constant 0 : i32
    %c0_i32_0 = arith.constant 0 : i32
    %c0_i32_1 = arith.constant 0 : i32
    return %c0_i32, %c0_i32_0 : i32, i32
  }
  func.func @transform_3(%arg0: i32) -> (i32, i32) {
    %c0_i32 = arith.constant 0 : i32
    %c0_i32_0 = arith.constant 0 : i32
    %c0_i32_1 = arith.constant 0 : i32
    return %c0_i32, %c0_i32_0 : i32, i32
  }
  func.func @transform_4(%arg0: i32) -> (i32, i32) {
    %c0_i32 = arith.constant 0 : i32
    %c0_i32_0 = arith.constant 0 : i32
    %c0_i32_1 = arith.constant 0 : i32
    return %c0_i32, %c0_i32_0 : i32, i32
  }
  func.func @transform_5(%arg0: i32) -> (i32, i32) {
    %c0_i32 = arith.constant 0 : i32
    %c0_i32_0 = arith.constant 0 : i32
    %c0_i32_1 = arith.constant 0 : i32
    return %c0_i32, %c0_i32_0 : i32, i32
  }
  func.func @transform_6(%arg0: i32) -> (i32, i32) {
    %c0_i32 = arith.constant 0 : i32
    %c0_i32_0 = arith.constant 0 : i32
    %c0_i32_1 = arith.constant 0 : i32
    return %c0_i32, %c0_i32_0 : i32, i32
  }
  func.func @transform_7(%arg0: i32) -> (i32, i32) {
    %c0_i32 = arith.constant 0 : i32
    %c0_i32_0 = arith.constant 0 : i32
    return %arg0, %c0_i32 : i32, i32
  }
}

</mosaic_0001>

<bundles_post_ra>
// kernel: dueling_q_forward.1
= control target key start
LH: loop header
LB: loop body
LE: loop exit
PB: predicated region body
PF: predicated region fallthrough
CT: control target
= control target key end

     0   :  { %12 = vsyncpa [#allocation3], 0  ;;  %s735_s0 = inlined_call_operand.hbm [shape: f32[8,16], index: 0, kind: input, shape index: {}]   ;;  %s736_s1 = inlined_call_operand.hbm [shape: f32[16,128], index: 1, kind: input, shape index: {}]   ;;  %s737_s2 = inlined_call_operand.vmem [shape: f32[1,128], index: 2, kind: input, shape index: {}]   ;;  %s738_s3 = inlined_call_operand.hbm [shape: f32[128,256], index: 3, kind: input, shape index: {}]   ;;  %s739_s4 = inlined_call_operand.vmem [shape: f32[1,256], index: 4, kind: input, shape index: {}]   ;;  %s740_s5 = inlined_call_operand.hbm [shape: f32[256,128], index: 5, kind: input, shape index: {}]   ;;  %s741_s6 = inlined_call_operand.vmem [shape: f32[1,128], index: 6, kind: input, shape index: {}]   ;;  %s742_s7 = inlined_call_operand.vmem [shape: f32[8,128], index: 7, kind: output, shape index: {}]  }
   0x1   :  { %13 = vsyncpa [#allocation5], 0 }
   0x2   :  { %14 = vsyncpa [#allocation8], 0  ;;  %s618_s24 = smov [#allocation4]   ;;  %s524_s28 = scalar_lea.hbm %s736_s1, 256 }
   0x3   :  { %s30_s25 = sshll.u32 %s618_s24, 4  ;;  %p525_p0 = scmp.ne.s32.totalorder %s736_s1, %s524_s28  ;;  %s31_s25 = int_to_ptr.vmem [resolvable:$true] %s30_s25 }
   0x4   :  { %p528_p1 = scmp.lt.u32.totalorder %s524_s28, %s736_s1 }
   0x6   :  { %p530_p2 = pnand %p528_p1, %p525_p0 }
   0x8   :  { %533 = shalt.err (!%p530_p2)
}
   0x9   :  { %s534_s10 = scalar_lea.vmem %s31_s25, 256  ;;  %p539_p4 = scmp.lt.s32.totalorder %s31_s25, %s31_s25 }
   0xa   :  { %p535_p3 = scmp.ne.s32.totalorder %s31_s25, %s534_s10  ;;  %p540_p5 = scmp.lt.s32.totalorder %s534_s10, %s534_s10 }
   0xc   :  { %p541_p6 = por %p540_p5, %p539_p4 }
   0xe   :  { %p542_p7 = pnand %p541_p6, %p535_p3 }
  0x10   :  { %545 = shalt.err (!%p542_p7)
}
  0x11   :  { %s619_s11 = smov 128   ;;  %s620_s12 = smov 8  }
  0x12   :  { %36 = dma.hbm_to_vmem [thread:$0]  %s736_s1, 256, %s31_s25, [#allocation5], %s619_s11, %s619_s11, %s620_s12  }
  0x13   :  { %s621_s15 = smov [#allocation2]   ;;  %s622_s17 = smov [#allocation6]  }
  0x14   :  { %s21_s16 = sshll.u32 %s621_s15, 4  ;;  %s44_s18 = sshll.u32 %s622_s17, 4  ;;  %s22_s16 = int_to_ptr.vmem [resolvable:$true] %s21_s16  ;;  %s45_s18 = int_to_ptr.vmem [resolvable:$true] %s44_s18 }
  0x15   :  { %s546_s21 = scalar_lea.hbm %s735_s0, 128 }
  0x16   :  { %p547_p8 = scmp.ne.s32.totalorder %s735_s0, %s546_s21  ;;  %p550_p9 = scmp.lt.u32.totalorder %s546_s21, %s735_s0 }
  0x18   :  { %p552_p10 = pnand %p550_p9, %p547_p8 }
  0x1a   :  { %555 = shalt.err (!%p552_p10)
}
  0x1b   :  { %s556_s1 = scalar_lea.vmem %s22_s16, 128  ;;  %p561_p12 = scmp.lt.s32.totalorder %s22_s16, %s22_s16 }
  0x1c   :  { %p557_p11 = scmp.ne.s32.totalorder %s22_s16, %s556_s1  ;;  %p562_p13 = scmp.lt.s32.totalorder %s556_s1, %s556_s1 }
  0x1e   :  { %p563_p0 = por %p562_p13, %p561_p12 }
  0x20   :  { %p564_p1 = pnand %p563_p0, %p557_p11 }
  0x22   :  { %567 = shalt.err (!%p564_p1)
}
  0x23   :  { %24 = dma.hbm_to_vmem [thread:$0]  %s735_s0, 128, %s22_s16, [#allocation3]  }
  0x24   :  { %s568_s30 = scalar_lea.hbm %s738_s3, 4096 }
  0x25   :  { %p569_p2 = scmp.ne.s32.totalorder %s738_s3, %s568_s30  ;;  %p572_p3 = scmp.lt.u32.totalorder %s568_s30, %s738_s3 }
  0x27   :  { %p574_p4 = pnand %p572_p3, %p569_p2 }
  0x29   :  { %577 = shalt.err (!%p574_p4)
}
  0x2a   :  { %s578_s14 = scalar_lea.vmem %s45_s18, 4096  ;;  %p583_p6 = scmp.lt.s32.totalorder %s45_s18, %s45_s18 }
  0x2b   :  { %p579_p5 = scmp.ne.s32.totalorder %s45_s18, %s578_s14  ;;  %p584_p7 = scmp.lt.s32.totalorder %s578_s14, %s578_s14 }
  0x2d   :  { %p585_p8 = por %p584_p7, %p583_p6 }
  0x2f   :  { %p586_p9 = pnand %p585_p8, %p579_p5 }
  0x31   :  { %589 = shalt.err (!%p586_p9)
}
  0x32   :  { %s623_s0 = smov 256   ;;  %s624_s15 = smov 16  }
  0x33   :  { %50 = dma.hbm_to_vmem [thread:$0]  %s738_s3, 4096, %s45_s18, [#allocation5], %s623_s0, %s623_s0, %s624_s15  }
  0x34   :  { %s625_s19 = smov [#allocation7]   ;;  %s590_s23 = scalar_lea.hbm %s740_s5, 4096 }
  0x35   :  { %s58_s20 = sshll.u32 %s625_s19, 4  ;;  %p591_p10 = scmp.ne.s32.totalorder %s740_s5, %s590_s23  ;;  %s59_s20 = int_to_ptr.vmem [resolvable:$true] %s58_s20 }
  0x36   :  { %p594_p11 = scmp.lt.u32.totalorder %s590_s23, %s740_s5 }
  0x38   :  { %p596_p12 = pnand %p594_p11, %p591_p10 }
  0x3a   :  { %599 = shalt.err (!%p596_p12)
}
  0x3b   :  { %s600_s27 = scalar_lea.vmem %s59_s20, 4096  ;;  %p605_p0 = scmp.lt.s32.totalorder %s59_s20, %s59_s20 }
  0x3c   :  { %p601_p13 = scmp.ne.s32.totalorder %s59_s20, %s600_s27  ;;  %p606_p1 = scmp.lt.s32.totalorder %s600_s27, %s600_s27 }
  0x3e   :  { %p607_p2 = por %p606_p1, %p605_p0 }
  0x40   :  { %p608_p3 = pnand %p607_p2, %p601_p13 }
  0x42   :  { %611 = shalt.err (!%p608_p3)
}
  0x43   :  { %64 = dma.hbm_to_vmem [thread:$0]  %s740_s5, 4096, %s59_s20, [#allocation8], %s619_s11, %s619_s11, %s620_s12  }
  0x44   :  { %612 = dma.done.wait [#allocation3], 128  }
  0x45   :  { %613 = vsyncadd [#allocation3], 4294967168 }
  0x46   :  { %614 = dma.done.wait [#allocation5], 4352  }
  0x47   :  { %615 = vsyncadd [#allocation5], 4294962944 }
  0x48   :  { %616 = dma.done.wait [#allocation8], 4096  }
  0x49   :  { %617 = vsyncadd [#allocation8], 4294963200  ;;  %v626_v0 = vmov 0.0|0.0   ;;  %vm627_vm0 = vmmov 0   ;;  %v628_v1 = vmov 0.0   ;;  %v80_v2 = vld [vmem:[#allocation4] sm:$0xff] }
  0x4a   :  { %446 = vmatprep.subr.bf16.mxu0 %v626_v0  ;;  %443 = vmatprep.mubr.msk.f32.mxu0 %vm627_vm0, %v628_v1  ;;  %v81_v3 = vld [vmem:[#allocation4 + $0x8] sm:$0xff]  ;;  %v79_v5 = vld [vmem:[#allocation2] sm:$0xff]  ;;  %v164_v8 = vld [vmem:[#allocation6] sm:$0xff]  ;;  %vm89_vm1 = vcmask 130048  }
  0x4b   :  { %272 = vmatprep.mubr.f32.mxu1 %v628_v1  ;;  %v447_v4 = vpack.c.bf16 %v81_v3, %v80_v2  ;;  %v165_v6 = vld [vmem:[#allocation6 + $0x8] sm:$0xff]  ;;  %v167_v7 = vld [vmem:[#allocation6 + $0x18] sm:$0xff]  ;;  %v166_v10 = vld [vmem:[#allocation6 + $0x10] sm:$0xff] }
  0x4c   :  { %v449_v9 = vpack.c.bf16 %v167_v7, %v165_v6  ;;  %v169_v11 = vld [vmem:[#allocation6 + $0x28] sm:$0xff]  ;;  %v171_v12 = vld [vmem:[#allocation6 + $0x38] sm:$0xff]  ;;  %v451_v13 = vpack.c.bf16 %v166_v10, %v164_v8  ;;  %v168_v15 = vld [vmem:[#allocation6 + $0x20] sm:$0xff] }
  0x4d   :  { %448 = vmatpush3.bf16.msra.mxu0 %v447_v4  ;;  %v453_v14 = vpack.c.bf16 %v171_v12, %v169_v11  ;;  %v170_v16 = vld [vmem:[#allocation6 + $0x30] sm:$0xff]  ;;  %v173_v17 = vld [vmem:[#allocation6 + $0x48] sm:$0xff]  ;;  %v175_v18 = vld [vmem:[#allocation6 + $0x58] sm:$0xff] }
  0x4e   :  { %450 = vmatprep.subr.bf16.mxu1 %v449_v9  ;;  %v455_v19 = vpack.c.bf16 %v170_v16, %v168_v15  ;;  %v457_v20 = vpack.c.bf16 %v175_v18, %v173_v17  ;;  %v172_v21 = vld [vmem:[#allocation6 + $0x40] sm:$0xff]  ;;  %v174_v22 = vld [vmem:[#allocation6 + $0x50] sm:$0xff]  ;;  %v177_v23 = vld [vmem:[#allocation6 + $0x68] sm:$0xff] }
  0x4f   :  { %452 = vmatpush1.bf16.msra.mxu1 %v451_v13  ;;  %v179_v24 = vld [vmem:[#allocation6 + $0x78] sm:$0xff]  ;;  %v459_v25 = vpack.c.bf16 %v174_v22, %v172_v21  ;;  %v176_v27 = vld [vmem:[#allocation6 + $0x60] sm:$0xff]  ;;  %v178_v28 = vld [vmem:[#allocation6 + $0x70] sm:$0xff] }
  0x50   :  { %444 = vmatmul.mubr.msk.f32.vlgmr.msra.gmra.mrb[0].mxu0 %vm89_vm1, %v79_v5  ;;  %454 = vmatprep.subr.bf16.mxu1 %v453_v14  ;;  %v461_v26 = vpack.c.bf16 %v179_v24, %v177_v23  ;;  %v181_v29 = vld [vmem:[#allocation6 + $0x88] sm:$0xff]  ;;  %v183_v30 = vld [vmem:[#allocation6 + $0x98] sm:$0xff]  ;;  %v463_v31 = vpack.c.bf16 %v178_v28, %v176_v27  ;;  %v180_v33 = vld [vmem:[#allocation6 + $0x80] sm:$0xff] }
  0x51   :  { %v465_v32 = vpack.c.bf16 %v183_v30, %v181_v29  ;;  %v182_v34 = vld [vmem:[#allocation6 + $0x90] sm:$0xff]  ;;  %v185_v35 = vld [vmem:[#allocation6 + $0xa8] sm:$0xff]  ;;  %v187_v36 = vld [vmem:[#allocation6 + $0xb8] sm:$0xff] }
  0x52   :  { %v467_v37 = vpack.c.bf16 %v182_v34, %v180_v33  ;;  %v469_v38 = vpack.c.bf16 %v187_v36, %v185_v35  ;;  %v184_v39 = vld [vmem:[#allocation6 + $0xa0] sm:$0xff]  ;;  %v186_v40 = vld [vmem:[#allocation6 + $0xb0] sm:$0xff]  ;;  %v189_v41 = vld [vmem:[#allocation6 + $0xc8] sm:$0xff] }
  0x53   :  { %456 = vmatpush1.bf16.msra.mxu1 %v455_v19  ;;  %v191_v42 = vld [vmem:[#allocation6 + $0xd8] sm:$0xff]  ;;  %v471_v43 = vpack.c.bf16 %v186_v40, %v184_v39  ;;  %v188_v45 = vld [vmem:[#allocation6 + $0xc0] sm:$0xff]  ;;  %v190_v46 = vld [vmem:[#allocation6 + $0xd0] sm:$0xff] }
  0x54   :  { %458 = vmatprep.subr.bf16.mxu1 %v457_v20  ;;  %v473_v44 = vpack.c.bf16 %v191_v42, %v189_v41  ;;  %v475_v47 = vpack.c.bf16 %v190_v46, %v188_v45  ;;  %v193_v48 = vld [vmem:[#allocation6 + $0xe8] sm:$0xff]  ;;  %v195_v49 = vld [vmem:[#allocation6 + $0xf8] sm:$0xff]  ;;  %v192_v51 = vld [vmem:[#allocation6 + $0xe0] sm:$0xff] }
  0x55   :  { %v477_v50 = vpack.c.bf16 %v195_v49, %v193_v48  ;;  %v194_v52 = vld [vmem:[#allocation6 + $0xf0] sm:$0xff]  ;;  %v297_v54 = vld [vmem:[#allocation7 + $0x80] sm:$0xff]  ;;  %v298_v55 = vld [vmem:[#allocation7 + $0x88] sm:$0xff] }
  0x56   :  { %v479_v53 = vpack.c.bf16 %v194_v52, %v192_v51  ;;  %v281_v56 = vld [vmem:[#allocation7] sm:$0xff]  ;;  %v481_v57 = vpack.c.bf16 %v298_v55, %v297_v54  ;;  %v282_v58 = vld [vmem:[#allocation7 + $0x8] sm:$0xff]  ;;  %v299_v59 = vld [vmem:[#allocation7 + $0x90] sm:$0xff] }
  0x57   :  { %460 = vmatpush1.bf16.msra.mxu1 %v459_v25  ;;  %v300_v60 = vld [vmem:[#allocation7 + $0x98] sm:$0xff]  ;;  %v483_v61 = vpack.c.bf16 %v282_v58, %v281_v56  ;;  %v283_v63 = vld [vmem:[#allocation7 + $0x10] sm:$0xff]  ;;  %v301_v1 = vld [vmem:[#allocation7 + $0xa0] sm:$0xff] }
  0x58   :  { %462 = vmatprep.subr.bf16.mxu1 %v461_v26  ;;  %v485_v62 = vpack.c.bf16 %v300_v60, %v299_v59  ;;  %v284_v0 = vld [vmem:[#allocation7 + $0x18] sm:$0xff]  ;;  %482 = vmatprep.subr.bf16.mxu0 %v481_v57  ;;  %v302_v2 = vld [vmem:[#allocation7 + $0xa8] sm:$0xff]  ;;  %v285_v5 = vld [vmem:[#allocation7 + $0x20] sm:$0xff] }
  0x59   :  { %484 = vmatpush3.bf16.msra.mxu0 %v483_v61  ;;  %v487_v3 = vpack.c.bf16 %v284_v0, %v283_v63  ;;  %v489_v4 = vpack.c.bf16 %v302_v2, %v301_v1  ;;  %v286_v6 = vld [vmem:[#allocation7 + $0x28] sm:$0xff]  ;;  %v303_v7 = vld [vmem:[#allocation7 + $0xb0] sm:$0xff]  ;;  %v304_v8 = vld [vmem:[#allocation7 + $0xb8] sm:$0xff] }
  0x5a   :  { %486 = vmatprep.subr.bf16.mxu0 %v485_v62  ;;  %v491_v9 = vpack.c.bf16 %v286_v6, %v285_v5  ;;  %v493_v10 = vpack.c.bf16 %v304_v8, %v303_v7  ;;  %v287_v11 = vld [vmem:[#allocation7 + $0x30] sm:$0xff]  ;;  %v288_v12 = vld [vmem:[#allocation7 + $0x38] sm:$0xff]  ;;  %v305_v13 = vld [vmem:[#allocation7 + $0xc0] sm:$0xff] }
  0x5b   :  { %464 = vmatpush1.bf16.msra.mxu1 %v463_v31  ;;  %v306_v14 = vld [vmem:[#allocation7 + $0xc8] sm:$0xff]  ;;  %v495_v15 = vpack.c.bf16 %v288_v12, %v287_v11  ;;  %v289_v17 = vld [vmem:[#allocation7 + $0x40] sm:$0xff]  ;;  %v307_v19 = vld [vmem:[#allocation7 + $0xd0] sm:$0xff] }
  0x5c   :  { %466 = vmatprep.subr.bf16.mxu1 %v465_v32  ;;  %v497_v16 = vpack.c.bf16 %v306_v14, %v305_v13  ;;  %v290_v18 = vld [vmem:[#allocation7 + $0x48] sm:$0xff]  ;;  %v308_v20 = vld [vmem:[#allocation7 + $0xd8] sm:$0xff]  ;;  %v291_v23 = vld [vmem:[#allocation7 + $0x50] sm:$0xff] }
  0x5d   :  { %488 = vmatpush3.bf16.msra.mxu0 %v487_v3  ;;  %v499_v21 = vpack.c.bf16 %v290_v18, %v289_v17  ;;  %v501_v22 = vpack.c.bf16 %v308_v20, %v307_v19  ;;  %v292_v24 = vld [vmem:[#allocation7 + $0x58] sm:$0xff]  ;;  %v309_v25 = vld [vmem:[#allocation7 + $0xe0] sm:$0xff]  ;;  %v310_v26 = vld [vmem:[#allocation7 + $0xe8] sm:$0xff] }
  0x5e   :  { %490 = vmatprep.subr.bf16.mxu0 %v489_v4  ;;  %v503_v27 = vpack.c.bf16 %v292_v24, %v291_v23  ;;  %v505_v28 = vpack.c.bf16 %v310_v26, %v309_v25  ;;  %v398_v29 = vld [vmem:[%s737_s2] ss:$0 sm:$0xff]  ;;  %v293_v34 = vld [vmem:[#allocation7 + $0x60] sm:$0xff]  ;;  %v295_v40 = vld [vmem:[#allocation7 + $0x70] sm:$0xff] }
  0x5f   :  { %468 = vmatpush1.bf16.msra.mxu1 %v467_v37  ;;  %v294_v35 = vld [vmem:[#allocation7 + $0x68] sm:$0xff]  ;;  %v311_v37 = vld [vmem:[#allocation7 + $0xf0] sm:$0xff]  ;;  %v296_v41 = vld [vmem:[#allocation7 + $0x78] sm:$0xff] }
  0x60   :  { %470 = vmatprep.subr.bf16.mxu1 %v469_v38  ;;  %v507_v36 = vpack.c.bf16 %v294_v35, %v293_v34  ;;  %v312_v38 = vld [vmem:[#allocation7 + $0xf8] sm:$0xff]  ;;  %v511_v42 = vpack.c.bf16 %v296_v41, %v295_v40  ;;  %v196_v46 = vld [vmem:[%s739_s4] sm:$0x3] }
  0x61   :  { %492 = vmatpush3.bf16.msra.mxu0 %v491_v9  ;;  %v509_v39 = vpack.c.bf16 %v312_v38, %v311_v37  ;;  %v400_v57 = vld [vmem:[%s741_s6] ss:$0 sm:$0xff] }
  0x62   :  { %494 = vmatprep.subr.bf16.mxu0 %v493_v10 }
  0x63   :  { %472 = vmatpush1.bf16.msra.mxu1 %v471_v43  ;;  %v198_v43 = vlaneseq }
  0x64   :  { %474 = vmatprep.subr.bf16.mxu1 %v473_v44 }
  0x65   :  { %496 = vmatpush3.bf16.msra.mxu0 %v495_v15  ;;  %v199_v44 = vshrl.u32 %v198_v43, 7 }
  0x66   :  { %498 = vmatprep.subr.bf16.mxu0 %v497_v16 }
  0x67   :  { %476 = vmatpush1.bf16.msra.mxu1 %v475_v47  ;;  %v200_v45 = vsub.s32 0, %v199_v44  ;;  %v204_v47 = vsub.s32 1, %v199_v44 }
  0x68   :  { %478 = vmatprep.subr.bf16.mxu1 %v477_v50 }
  0x69   :  { %500 = vmatpush3.bf16.msra.mxu0 %v499_v21  ;;  %v201_v48 = vrot.slane %v196_v46, %v200_v45  ;;  %v205_v49 = vrot.slane %v196_v46, %v204_v47 }
  0x6a   :  { %502 = vmatprep.subr.bf16.mxu0 %v501_v22 }
  0x6b   :  { %480 = vmatpush1.bf16.msra.mxu1 %v479_v53 }
  0x6d   :  { %504 = vmatpush3.bf16.msra.mxu0 %v503_v27 }
  0x6e   :  { %506 = vmatprep.subr.bf16.mxu0 %v505_v28 }
  0x71   :  { %508 = vmatpush3.bf16.msra.mxu0 %v507_v36 }
  0x72   :  { %510 = vmatprep.subr.bf16.mxu0 %v509_v39 }
  0x75   :  { %512 = vmatpush3.bf16.msra.mxu0 %v511_v42 }
 0x123   :  { %v159_v30 = vpop.f32.mrb[0].mxu0 }
 0x124   :  { %v160_v31 = vadd.f32 %v398_v29, %v159_v30  ;;  %v445_v32 = vpop.f32.mrb[1].mxu0 }
 0x126   :  { %v163_v33 = vmax.f32 %v160_v31, 0.0 }
 0x128   :  { %273 = vmatmul.mubr.f32.vlgmr.msra.gmra.mrb[0].mxu1 %v163_v33 }
 0x1fb   :  { %v274_v50 = vpop.f32.mrb[0].mxu1 }
 0x1fc   :  { %v275_v51 = vadd.f32 %v274_v50, %v201_v48  ;;  %v276_v52 = vpop.f32.mrb[1].mxu1 }
 0x1fd   :  { %v277_v53 = vadd.f32 %v276_v52, %v205_v49 }
 0x1fe   :  { %v279_v55 = vmax.f32 %v275_v51, 0.0 }
 0x1ff   :  { %v280_v54 = vmax.f32 %v277_v53, 0.0 }
 0x201   :  { %384 = vmatprep.mubr.f32.mxu0 %v280_v54 }
 0x202   :  { %385 = vmatmul.mubr.f32.vlgmr.msra.gmra.mrb[2].mxu0 %v279_v55 }
 0x2d5   :  { %v436_v56 = vpop.f32.mrb[2].mxu0 }
 0x2d6   :  { %v437_v58 = vpop.f32.mrb[3].mxu0 }
 0x2d7   :  { %v438_v59 = vadd.f32 %v437_v58, %v436_v56 }
 0x2d9   :  { %v387_v60 = vadd.f32 %v438_v59, %v400_v57 }
 0x2db   :  { %390 = vst [vmem:[%s742_s7] sm:$0xff] %v387_v60 }
 0x2dc   :  { %395 = vsyncpa [#allocation3], 1 }
 0x2dd   :  { %396 = vsyncpa [#allocation5], 1 }
 0x2de   :  { %397 = vsyncpa [#allocation8], 1 }

</bundles_post_ra>
